<compile_context>
chip_gen: v7x
topology: tpu7x:2x2x1
jax: 0.10.0
libtpu: 0.0.40
codegen_flags: <defaults>
</compile_context>

<pallas_src>
import functools

import jax
import jax.numpy as jnp
from jax import lax
from jax.experimental import pallas as pl
from jax.experimental.pallas import tpu as pltpu

LANE = 128  # TPU lane width; hidden dim is zero-padded up to this.


def _seq_attn_match_kernel(xy_ref, mask_ref, wt_ref, b_ref, o_ref, *, l1):
    """Fused SeqAttnMatch forward for the whole batch (single grid step).

    xy_ref  : (B, L1+L2, Hp)  x and y concatenated along the token axis
    mask_ref: (B, L1, L2)     additive mask (0 = real token, -inf = padding)
    wt_ref  : (Hp, Hp)        transposed nn.Linear weight (zero padded)
    b_ref   : (1, Hp)         bias (zero padded)
    o_ref   : (B, L1, Hp)     matched sequence (padded hidden dim)
    """
    xy = xy_ref[...]
    b_sz, l_tot, hp = xy.shape

    # One fused projection + ReLU for both x and y (shared Linear weights).
    xy2 = xy.reshape(b_sz * l_tot, hp)
    proj = jnp.dot(xy2, wt_ref[...], preferred_element_type=jnp.float32)
    proj = jnp.maximum(proj + b_ref[...], 0.0).reshape(b_sz, l_tot, hp)

    x_proj = proj[:, :l1, :]      # (B, L1, Hp)
    y_proj = proj[:, l1:, :]      # (B, L2, Hp)
    y_orig = xy[:, l1:, :]        # (B, L2, Hp)  original (unprojected) y

    # scores[b, q, k] = <x_proj[b, q], y_proj[b, k]>  -- no explicit transpose.
    scores = lax.dot_general(
        x_proj, y_proj,
        dimension_numbers=(((2,), (2,)), ((0,), (0,))),
        preferred_element_type=jnp.float32)           # (B, L1, L2)

    # Additive mask (0 / -inf), precomputed in the wrapper.
    scores = scores + mask_ref[...]

    # Softmax over L2.  NOTE: a row where every y position is padding yields
    # NaN (max = -inf), exactly matching the PyTorch masked_fill + softmax.
    m = jnp.max(scores, axis=-1, keepdims=True)
    e = jnp.exp(scores - m)
    denom = jnp.sum(e, axis=-1, keepdims=True)
    alpha = e * pl.reciprocal(denom, approx=False)

    # matched[b, q] = sum_k alpha[b, q, k] * y[b, k]
    matched = lax.dot_general(
        alpha, y_orig,
        dimension_numbers=(((2,), (1,)), ((0,), (0,))),
        preferred_element_type=jnp.float32)           # (B, L1, Hp)
    o_ref[...] = matched.astype(o_ref.dtype)


def seq_attn_match(x, y, y_mask, w_t, b):
    """SeqAttnMatch forward. x:(B,L1,H) y:(B,L2,H) y_mask:(B,L2) -> (B,L1,H)."""
    B, L1, H = x.shape
    _, L2, _ = y.shape
    Hp = ((H + LANE - 1) // LANE) * LANE
    Hp = max(Hp, LANE)
    pad_h = Hp - H
    L = L1 + L2
    f32 = jnp.float32

    # Zero-pad the hidden dim to a full lane width (math is exact).
    xp = jnp.pad(x.astype(f32), ((0, 0), (0, 0), (0, pad_h)))
    yp = jnp.pad(y.astype(f32), ((0, 0), (0, 0), (0, pad_h)))
    wtp = jnp.pad(w_t.astype(f32), ((0, pad_h), (0, pad_h)))
    bp = jnp.pad(b.astype(f32), ((0, 0), (0, pad_h)))

    # Fuse the x / y projections: concatenate along the token axis.
    xy = jnp.concatenate([xp, yp], axis=1)            # (B, L1+L2, Hp)

    # Additive mask: 0 for real tokens, -inf for padding (== masked_fill).
    add_mask = jnp.broadcast_to(
        jnp.where(y_mask[:, None, :] > 0, -jnp.inf, 0.0).astype(f32),
        (B, L1, L2))

    flops = (2 * B * L * Hp * Hp          # fused projection
             + 2 * B * L1 * L2 * Hp       # scores
             + 2 * B * L1 * L2 * Hp)      # alpha @ y
    bytes_accessed = 4 * (B * L * Hp + B * L1 * L2 + Hp * Hp + Hp
                          + B * L1 * Hp)
    cost = pl.CostEstimate(flops=flops, transcendentals=B * L1 * L2,
                           bytes_accessed=bytes_accessed)

    kernel = functools.partial(_seq_attn_match_kernel, l1=L1)
    out_padded = pl.pallas_call(
        kernel,
        out_shape=jax.ShapeDtypeStruct((B, L1, Hp), f32),
        grid_spec=pl.GridSpec(
            grid=(1,),
            in_specs=[
                pl.BlockSpec((B, L, Hp), lambda i: (0, 0, 0)),
                pl.BlockSpec((B, L1, L2), lambda i: (0, 0, 0)),
                pl.BlockSpec((Hp, Hp), lambda i: (0, 0)),
                pl.BlockSpec((1, Hp), lambda i: (0, 0)),
            ],
            out_specs=pl.BlockSpec((B, L1, Hp), lambda i: (0, 0, 0)),
        ),
        compiler_params=pltpu.CompilerParams(
            dimension_semantics=("arbitrary",),
            vmem_limit_bytes=32 * 1024 * 1024,
        ),
        cost_estimate=cost,
    )(xy, add_mask, wtp, bp)

    # Strip the hidden-dim padding outside the kernel (lane-dense store inside).
    return out_padded[:, :, :H].astype(x.dtype)


def reference(x, y, y_mask, w_t, b):
    x_proj = jax.nn.relu(jnp.einsum("blh,hk->blk", x, w_t) + b[0])
    y_proj = jax.nn.relu(jnp.einsum("blh,hk->blk", y, w_t) + b[0])
    scores = jnp.einsum("bqh,bkh->bqk", x_proj, y_proj)
    scores = jnp.where(y_mask[:, None, :] > 0, -jnp.inf, scores)
    alpha = jax.nn.softmax(scores, axis=-1)
    return jnp.einsum("bqk,bkh->bqh", alpha, y)


if __name__ == "__main__":
    B, L1, L2, H = 2, 8, 8, 32
    para_init = 0.1

    key = jax.random.PRNGKey(0)
    kx, ky, kw, kb = jax.random.split(key, 4)

    x = jax.random.normal(kx, (B, L1, H), dtype=jnp.float32)
    y = jax.random.normal(ky, (B, L2, H), dtype=jnp.float32)
    # 1 = padding, 0 = real token; keep at least some real tokens per row.
    y_mask = jnp.zeros((B, L2), dtype=jnp.int32).at[:, L2 - 2:].set(1)

    # Deterministic parameter init (synthetic, no checkpoint load).
    w = jax.random.normal(kw, (H, H), dtype=jnp.float32) * para_init
    b = jax.random.normal(kb, (1, H), dtype=jnp.float32) * para_init
    w_t = w.T  # so that linear(x) == x @ w_t + b

    out = seq_attn_match(x, y, y_mask, w_t, b)
    out = jax.block_until_ready(out)

    ref = reference(x, y, y_mask, w_t, b)
    assert out.shape == (B, L1, H)
    assert jnp.allclose(out, ref, atol=1e-5, rtol=1e-5), "mismatch vs reference"

    print("KERNEL_OK")
</pallas_src>

<mosaic_0001>
module attributes {stable_mosaic.version = 11 : i64} {
  func.func @_seq_attn_match_kernel(%arg0: i32, %arg1: memref<2x16x128xf32, #tpu.memory_space<vmem>>, %arg2: memref<2x8x8xf32, #tpu.memory_space<vmem>>, %arg3: memref<128x128xf32, #tpu.memory_space<vmem>>, %arg4: memref<1x128xf32, #tpu.memory_space<vmem>>, %arg5: memref<2x8x128xf32, #tpu.memory_space<vmem>>) attributes {dimension_semantics = [#tpu.dimension_semantics<arbitrary>], iteration_bounds = array<i64: 1>, scalar_prefetch = 0 : i64, scratch_operands = 0 : i64, tpu.core_type = #tpu.core_type<tc>, window_params = [{pipeline_mode = #tpu.pipeline_mode<synchronous>, transform_indices = @transform_0, window_bounds = array<i64: 2, 16, 128>}, {pipeline_mode = #tpu.pipeline_mode<synchronous>, transform_indices = @transform_1, window_bounds = array<i64: 2, 8, 8>}, {pipeline_mode = #tpu.pipeline_mode<synchronous>, transform_indices = @transform_2, window_bounds = array<i64: 128, 128>}, {pipeline_mode = #tpu.pipeline_mode<synchronous>, transform_indices = @transform_3, window_bounds = array<i64: 1, 128>}, {pipeline_mode = #tpu.pipeline_mode<synchronous>, transform_indices = @transform_4, window_bounds = array<i64: 2, 8, 128>}]} {
    %c0 = arith.constant 0 : index
    %c0_0 = arith.constant 0 : index
    %c0_1 = arith.constant 0 : index
    %0 = vector.load %arg1[%c0, %c0_0, %c0_1] : memref<2x16x128xf32, #tpu.memory_space<vmem>>, vector<2x16x128xf32>
    %1 = vector.shape_cast %0 : vector<2x16x128xf32> to vector<32x128xf32>
    %c0_2 = arith.constant 0 : index
    %c0_3 = arith.constant 0 : index
    %2 = vector.load %arg3[%c0_2, %c0_3] : memref<128x128xf32, #tpu.memory_space<vmem>>, vector<128x128xf32>
    %cst = arith.constant dense<0.000000e+00> : vector<32x128xf32>
    %3 = tpu.matmul %1, %2, %cst {dimension_numbers = #tpu.dot_dimension_numbers<[1], [0], [0], [1], [0, 0, 1, 1], [], []>} : vector<32x128xf32>, vector<128x128xf32>, vector<32x128xf32> -> vector<32x128xf32>
    %c0_4 = arith.constant 0 : index
    %c0_5 = arith.constant 0 : index
    %4 = vector.load %arg4[%c0_4, %c0_5] : memref<1x128xf32, #tpu.memory_space<vmem>>, vector<1x128xf32>
    %5 = vector.broadcast %4 : vector<1x128xf32> to vector<32x128xf32>
    %6 = arith.addf %3, %5 : vector<32x128xf32>
    %cst_6 = arith.constant 0.000000e+00 : f32
    %7 = vector.broadcast %cst_6 : f32 to vector<32x128xf32>
    %8 = arith.maximumf %6, %7 : vector<32x128xf32>
    %9 = vector.shape_cast %8 : vector<32x128xf32> to vector<2x16x128xf32>
    %10 = vector.extract_strided_slice %9 {offsets = [0, 0, 0], sizes = [2, 8, 128], strides = [1, 1, 1]} : vector<2x16x128xf32> to vector<2x8x128xf32>
    %11 = vector.extract_strided_slice %9 {offsets = [0, 8, 0], sizes = [2, 8, 128], strides = [1, 1, 1]} : vector<2x16x128xf32> to vector<2x8x128xf32>
    %12 = vector.extract_strided_slice %0 {offsets = [0, 8, 0], sizes = [2, 8, 128], strides = [1, 1, 1]} : vector<2x16x128xf32> to vector<2x8x128xf32>
    %cst_7 = arith.constant dense<0.000000e+00> : vector<2x8x8xf32>
    %13 = tpu.matmul %10, %11, %cst_7 {dimension_numbers = #tpu.dot_dimension_numbers<[2], [2], [1], [1], [0, 0, 0, 1, 1, 1], [0], [0]>} : vector<2x8x128xf32>, vector<2x8x128xf32>, vector<2x8x8xf32> -> vector<2x8x8xf32>
    %c0_8 = arith.constant 0 : index
    %c0_9 = arith.constant 0 : index
    %c0_10 = arith.constant 0 : index
    %14 = vector.load %arg2[%c0_8, %c0_9, %c0_10] : memref<2x8x8xf32, #tpu.memory_space<vmem>>, vector<2x8x8xf32>
    %15 = arith.addf %13, %14 : vector<2x8x8xf32>
    %cst_11 = arith.constant dense<0xFF800000> : vector<2x8xf32>
    %16 = vector.multi_reduction <maximumf>, %15, %cst_11 [2] : vector<2x8x8xf32> to vector<2x8xf32>
    %17 = vector.shape_cast %16 : vector<2x8xf32> to vector<2x8x1xf32>
    %18 = vector.broadcast %17 : vector<2x8x1xf32> to vector<2x8x8xf32>
    %19 = arith.subf %15, %18 : vector<2x8x8xf32>
    %20 = math.exp %19 : vector<2x8x8xf32>
    %cst_12 = arith.constant dense<0.000000e+00> : vector<2x8xf32>
    %21 = vector.multi_reduction <add>, %20, %cst_12 [2] : vector<2x8x8xf32> to vector<2x8xf32>
    %22 = vector.shape_cast %21 : vector<2x8xf32> to vector<2x8x1xf32>
    %23 = tpu.reciprocal %22 : vector<2x8x1xf32> -> vector<2x8x1xf32>
    %24 = vector.broadcast %23 : vector<2x8x1xf32> to vector<2x8x8xf32>
    %25 = arith.mulf %20, %24 : vector<2x8x8xf32>
    %cst_13 = arith.constant dense<0.000000e+00> : vector<2x8x128xf32>
    %26 = tpu.matmul %25, %12, %cst_13 {dimension_numbers = #tpu.dot_dimension_numbers<[2], [1], [1], [2], [0, 0, 0, 1, 1, 2], [0], [0]>} : vector<2x8x8xf32>, vector<2x8x128xf32>, vector<2x8x128xf32> -> vector<2x8x128xf32>
    %c0_14 = arith.constant 0 : index
    %c0_15 = arith.constant 0 : index
    %c0_16 = arith.constant 0 : index
    %27 = vector.load %arg5[%c0_14, %c0_15, %c0_16] : memref<2x8x128xf32, #tpu.memory_space<vmem>>, vector<2x8x128xf32>
    tpu.vector_store %arg5[%c0_14, %c0_15, %c0_16], %26 {strides = array<i32>} : memref<2x8x128xf32, #tpu.memory_space<vmem>>, vector<2x8x128xf32>,
    return
  }
  func.func @transform_0(%arg0: i32) -> (i32, i32, i32) {
    %c0_i32 = arith.constant 0 : i32
    %c0_i32_0 = arith.constant 0 : i32
    %c0_i32_1 = arith.constant 0 : i32
    %c0_i32_2 = arith.constant 0 : i32
    return %c0_i32, %c0_i32_0, %c0_i32_1 : i32, i32, i32
  }
  func.func @transform_1(%arg0: i32) -> (i32, i32, i32) {
    %c0_i32 = arith.constant 0 : i32
    %c0_i32_0 = arith.constant 0 : i32
    %c0_i32_1 = arith.constant 0 : i32
    %c0_i32_2 = arith.constant 0 : i32
    return %c0_i32, %c0_i32_0, %c0_i32_1 : i32, i32, i32
  }
  func.func @transform_2(%arg0: i32) -> (i32, i32) {
    %c0_i32 = arith.constant 0 : i32
    %c0_i32_0 = arith.constant 0 : i32
    %c0_i32_1 = arith.constant 0 : i32
    return %c0_i32, %c0_i32_0 : i32, i32
  }
  func.func @transform_3(%arg0: i32) -> (i32, i32) {
    %c0_i32 = arith.constant 0 : i32
    %c0_i32_0 = arith.constant 0 : i32
    %c0_i32_1 = arith.constant 0 : i32
    return %c0_i32, %c0_i32_0 : i32, i32
  }
  func.func @transform_4(%arg0: i32) -> (i32, i32, i32) {
    %c0_i32 = arith.constant 0 : i32
    %c0_i32_0 = arith.constant 0 : i32
    %c0_i32_1 = arith.constant 0 : i32
    %c0_i32_2 = arith.constant 0 : i32
    return %c0_i32, %c0_i32_0, %c0_i32_1 : i32, i32, i32
  }
}

</mosaic_0001>

<bundles_post_ra>
// kernel: tpu_custom_call.1
= control target key start
LH: loop header
LB: loop body
LE: loop exit
PB: predicated region body
PF: predicated region fallthrough
CT: control target
= control target key end

     0   :  { %9 = vsyncpa [#allocation3], 0  ;;  %s862_s0 = inlined_call_operand.hbm [shape: f32[2,16,128], index: 0, kind: input, shape index: {}]   ;;  %s863_s1 = inlined_call_operand.hbm [shape: f32[2,8,8], index: 1, kind: input, shape index: {}]   ;;  %s864_s2 = inlined_call_operand.hbm [shape: f32[128,128], index: 2, kind: input, shape index: {}]   ;;  %s865_s3 = inlined_call_operand.vmem [shape: f32[1,128], index: 3, kind: input, shape index: {}]   ;;  %s866_s4 = inlined_call_operand.hbm [shape: f32[2,8,128], index: 4, kind: output, shape index: {}]  }
   0x1   :  { %10 = vsyncpa [#allocation6], 0 }
   0x2   :  { %11 = vsyncpa [#allocation4], 0  ;;  %s737_s15 = smov [#allocation5]   ;;  %s738_s17 = smov [#allocation2]  }
   0x3   :  { %s29_s16 = sshll.u32 %s737_s15, 4  ;;  %s17_s18 = sshll.u32 %s738_s17, 4  ;;  %s30_s16 = int_to_ptr.vmem [resolvable:$true] %s29_s16  ;;  %s770_s18 = int_to_ptr.vmem [resolvable:$true] %s17_s18 }
   0x4   :  { %s643_s21 = scalar_lea.hbm %s863_s1, 256 }
   0x5   :  { %p644_p0 = scmp.ne.s32.totalorder %s863_s1, %s643_s21  ;;  %p647_p1 = scmp.lt.u32.totalorder %s643_s21, %s863_s1 }
   0x7   :  { %p649_p2 = pnand %p647_p1, %p644_p0 }
   0x9   :  { %652 = shalt.err (!%p649_p2)
}
   0xa   :  { %s653_s26 = scalar_lea.vmem %s30_s16, 256  ;;  %p658_p4 = scmp.lt.s32.totalorder %s30_s16, %s30_s16 }
   0xb   :  { %p654_p3 = scmp.ne.s32.totalorder %s30_s16, %s653_s26  ;;  %p659_p5 = scmp.lt.s32.totalorder %s653_s26, %s653_s26 }
   0xd   :  { %p660_p6 = por %p659_p5, %p658_p4 }
   0xf   :  { %p661_p7 = pnand %p660_p6, %p654_p3 }
  0x11   :  { %664 = shalt.err (!%p661_p7)
}
  0x12   :  { %s739_s27 = smov 128   ;;  %s740_s28 = smov 8  }
  0x13   :  { %35 = dma.hbm_to_vmem [thread:$0]  %s863_s1, 256, %s30_s16, [#allocation6], %s739_s27, %s739_s27, %s740_s28  }
  0x14   :  { %s665_s7 = scalar_lea.hbm %s862_s0, 512 }
  0x15   :  { %p666_p8 = scmp.ne.s32.totalorder %s862_s0, %s665_s7  ;;  %p669_p9 = scmp.lt.u32.totalorder %s665_s7, %s862_s0 }
  0x17   :  { %p671_p10 = pnand %p669_p9, %p666_p8 }
  0x19   :  { %674 = shalt.err (!%p671_p10)
}
  0x1a   :  { %s675_s12 = scalar_lea.vmem %s770_s18, 512  ;;  %p680_p12 = scmp.lt.s32.totalorder %s770_s18, %s770_s18 }
  0x1b   :  { %p676_p11 = scmp.ne.s32.totalorder %s770_s18, %s675_s12  ;;  %p681_p13 = scmp.lt.s32.totalorder %s675_s12, %s675_s12 }
  0x1d   :  { %p682_p0 = por %p681_p13, %p680_p12 }
  0x1f   :  { %p683_p1 = pnand %p682_p0, %p676_p11 }
  0x21   :  { %686 = shalt.err (!%p683_p1)
}
  0x22   :  { %23 = dma.hbm_to_vmem [thread:$0]  %s862_s0, 512, %s770_s18, [#allocation3], %s739_s27, %s739_s27, %s740_s28  }
  0x23   :  { %s741_s14 = smov [#allocation7]   ;;  %s687_s19 = scalar_lea.hbm %s864_s2, 2048 }
  0x24   :  { %s41_s15 = sshll.u32 %s741_s14, 4  ;;  %p688_p2 = scmp.ne.s32.totalorder %s864_s2, %s687_s19  ;;  %s42_s15 = int_to_ptr.vmem [resolvable:$true] %s41_s15 }
  0x25   :  { %p691_p3 = scmp.lt.u32.totalorder %s687_s19, %s864_s2 }
  0x27   :  { %p693_p4 = pnand %p691_p3, %p688_p2 }
  0x29   :  { %696 = shalt.err (!%p693_p4)
}
  0x2a   :  { %s697_s24 = scalar_lea.vmem %s42_s15, 2048  ;;  %p702_p6 = scmp.lt.s32.totalorder %s42_s15, %s42_s15 }
  0x2b   :  { %p698_p5 = scmp.ne.s32.totalorder %s42_s15, %s697_s24  ;;  %p703_p7 = scmp.lt.s32.totalorder %s697_s24, %s697_s24 }
  0x2d   :  { %p704_p8 = por %p703_p7, %p702_p6 }
  0x2f   :  { %p705_p9 = pnand %p704_p8, %p698_p5 }
  0x31   :  { %708 = shalt.err (!%p705_p9)
}
  0x32   :  { %47 = dma.hbm_to_vmem [thread:$0]  %s864_s2, 2048, %s42_s15, [#allocation6], %s739_s27, %s739_s27, %s740_s28  }
  0x33   :  { %731 = dma.done.wait [#allocation3], 512  }
  0x34   :  { %732 = vsyncadd [#allocation3], 4294966784 }
  0x35   :  { %733 = dma.done.wait [#allocation6], 2304  }
  0x36   :  { %734 = vsyncadd [#allocation6], 4294964992  ;;  %v63_v0 = vld [vmem:[#allocation7] sm:$0xff]  ;;  %v64_v1 = vld [vmem:[#allocation7 + $0x8] sm:$0xff]  ;;  %v742_v28 = vmov 0.0   ;;  %vm743_vm0 = vmmov 0  }
  0x37   :  { %v65_v2 = vld [vmem:[#allocation7 + $0x10] sm:$0xff]  ;;  %v595_v3 = vpack.c.bf16 %v64_v1, %v63_v0  ;;  %v66_v4 = vld [vmem:[#allocation7 + $0x18] sm:$0xff]  ;;  %v67_v6 = vld [vmem:[#allocation7 + $0x20] sm:$0xff]  ;;  %575 = vmatprep.subr.mxu1 %v742_v28  ;;  %577 = vmatprep.mubr.msk.f32.mxu1 %vm743_vm0, %v742_v28  ;;  %vm317_vm1 = vcmask 64512  }
  0x38   :  { %v599_v5 = vpack.c.bf16 %v66_v4, %v65_v2  ;;  %v68_v7 = vld [vmem:[#allocation7 + $0x28] sm:$0xff]  ;;  %v59_v9 = vld [vmem:[#allocation2] sm:$0xff]  ;;  %v70_v11 = vld [vmem:[#allocation7 + $0x38] sm:$0xff] }
  0x39   :  { %596 = vmatprep.subr.bf16.mxu0 %v595_v3  ;;  %v603_v8 = vpack.c.bf16 %v68_v7, %v67_v6  ;;  %v69_v10 = vld [vmem:[#allocation7 + $0x30] sm:$0xff]  ;;  %569 = vmatprep.mubr.f32.mxu0 %v59_v9  ;;  %v71_v13 = vld [vmem:[#allocation7 + $0x40] sm:$0xff]  ;;  %v72_v14 = vld [vmem:[#allocation7 + $0x48] sm:$0xff] }
  0x3a   :  { %598 = vmatpush3.bf16.msra.mxu0 %v595_v3  ;;  %v607_v12 = vpack.c.bf16 %v70_v11, %v69_v10  ;;  %v611_v15 = vpack.c.bf16 %v72_v14, %v71_v13  ;;  %v73_v16 = vld [vmem:[#allocation7 + $0x50] sm:$0xff]  ;;  %v74_v17 = vld [vmem:[#allocation7 + $0x58] sm:$0xff]  ;;  %v75_v19 = vld [vmem:[#allocation7 + $0x60] sm:$0xff] }
  0x3b   :  { %600 = vmatprep.subr.bf16.mxu0 %v599_v5  ;;  %v615_v18 = vpack.c.bf16 %v74_v17, %v73_v16  ;;  %v76_v20 = vld [vmem:[#allocation7 + $0x68] sm:$0xff]  ;;  %v77_v22 = vld [vmem:[#allocation7 + $0x70] sm:$0xff]  ;;  %v78_v23 = vld [vmem:[#allocation7 + $0x78] sm:$0xff] }
  0x3c   :  { %v619_v21 = vpack.c.bf16 %v76_v20, %v75_v19  ;;  %v623_v24 = vpack.c.bf16 %v78_v23, %v77_v22  ;;  %v60_v25 = vld [vmem:[#allocation2 + $0x8] sm:$0xff]  ;;  %v61_v26 = vld [vmem:[#allocation2 + $0x10] sm:$0xff]  ;;  %v822_v27 = vld [vmem:[#allocation2 + $0x18] sm:$0xff] }
  0x3d   :  { %v506_v29 = vld [vmem:[%s865_s3] ss:$0 sm:$0xff]  ;;  %v176_v46 = vld [vmem:[#allocation5 + $0x8] sm:$0xff]  ;;  %s744_s3 = smov [#allocation8]  }
  0x3e   :  { %602 = vmatpush3.bf16.msra.mxu0 %v599_v5  ;;  %v175_v42 = vld [vmem:[#allocation5] sm:$0xff]  ;;  %s493_s26 = sshll.u32 %s744_s3, 4  ;;  %s494_s26 = int_to_ptr.vmem [resolvable:$true] %s493_s26 }
  0x3f   :  { %604 = vmatprep.subr.bf16.mxu0 %v603_v8  ;;  %s709_s29 = scalar_lea.vmem %s494_s26, 256  ;;  %p714_p11 = scmp.lt.s32.totalorder %s494_s26, %s494_s26 }
  0x40   :  { %p710_p10 = scmp.ne.s32.totalorder %s494_s26, %s709_s29  ;;  %p715_p12 = scmp.lt.s32.totalorder %s709_s29, %s709_s29 }
  0x42   :  { %606 = vmatpush3.bf16.msra.mxu0 %v603_v8  ;;  %p716_p13 = por %p715_p12, %p714_p11 }
  0x43   :  { %608 = vmatprep.subr.bf16.mxu0 %v607_v12 }
  0x44   :  { %p717_p0 = pnand %p716_p13, %p710_p10 }
  0x46   :  { %610 = vmatpush3.bf16.msra.mxu0 %v607_v12 }
  0x47   :  { %612 = vmatprep.subr.bf16.mxu0 %v611_v15 }
  0x4a   :  { %614 = vmatpush3.bf16.msra.mxu0 %v611_v15 }
  0x4b   :  { %616 = vmatprep.subr.bf16.mxu0 %v615_v18 }
  0x4e   :  { %618 = vmatpush3.bf16.msra.mxu0 %v615_v18 }
  0x4f   :  { %620 = vmatprep.subr.bf16.mxu0 %v619_v21 }
  0x52   :  { %622 = vmatpush3.bf16.msra.mxu0 %v619_v21 }
  0x53   :  { %624 = vmatprep.subr.bf16.mxu0 %v623_v24 }
  0x56   :  { %626 = vmatpush3.bf16.msra.mxu0 %v623_v24 }
  0x59   :  { %570 = vmatmul.mubr.f32.vlgmr.msra.gmra.mrb[0].mxu0 %v60_v25 }
  0x5a   :  { %572 = vmatprep.mubr.f32.mxu0 %v61_v26 }
  0x5d   :  { %573 = vmatmul.mubr.f32.gmra.mrb[2].mxu0 %v822_v27 }
 0x12c   :  { %v571_v30 = vpop.f32.mrb[0].mxu0 }
 0x12d   :  { %v158_v31 = vadd.f32 %v571_v30, %v506_v29  ;;  %v152_v32 = vpop.f32.mrb[1].mxu0 }
 0x12e   :  { %v153_v33 = vadd.f32 %v506_v29, %v152_v32 }
 0x12f   :  { %v172_v34 = vmax.f32 %v158_v31, 0.0 }
 0x130   :  { %v574_v35 = vpop.f32.mrb[2].mxu0  ;;  %v171_v38 = vmax.f32 %v153_v33, 0.0 }
 0x131   :  { %v168_v36 = vadd.f32 %v574_v35, %v506_v29  ;;  %v162_v37 = vpop.f32.mrb[3].mxu0  ;;  %576 = vmatpush3.xpose.msra.mxu1 %v172_v34 }
 0x132   :  { %v163_v39 = vadd.f32 %v506_v29, %v162_v37  ;;  %580 = vmatprep.subr.mxu1 %v742_v28 }
 0x133   :  { %v174_v40 = vmax.f32 %v168_v36, 0.0 }
 0x134   :  { %578 = vmatmul.mubr.f32.vlgmr.msra.gmra.mrb[0].mxu1 %v171_v38  ;;  %v173_v41 = vmax.f32 %v163_v39, 0.0 }
 0x135   :  { %581 = vmatpush3.xpose.msra.mxu1 %v174_v40  ;;  %582 = vmatprep.mubr.msk.f32.mxu1 %vm743_vm0, %v742_v28 }
 0x136   :  { %585 = vmatprep.subr.mxu1 %v742_v28 }
 0x138   :  { %583 = vmatmul.mubr.f32.vlgmr.msra.gmra.mrb[2].mxu1 %v173_v41 }
 0x139   :  { %586 = vmatpush3.msra.mxu1 %v60_v25  ;;  %587 = vmatprep.mubr.msk.f32.mxu1 %vm743_vm0, %v742_v28 }
 0x13a   :  { %590 = vmatprep.subr.mxu1 %v742_v28 }
 0x207   :  { %v243_v43 = vpop.f32.mrb[0].mxu1 }
 0x208   :  { %v244_v44 = vadd.f32 %v243_v43, %v175_v42  ;;  %v579_v45 = vpop.f32.mrb[1].mxu1 }
 0x20a   :  { %v318_v47 = vsel %vm317_vm1, %v244_v44, -inf }
 0x20b   :  { %319 = vmax.xlane.f32.xlu0 %v318_v47  ;;  %v313_v48 = vpop.f32.mrb[2].mxu1 }
 0x20c   :  { %v314_v49 = vadd.f32 %v313_v48, %v176_v46  ;;  %v584_v50 = vpop.f32.mrb[3].mxu1 }
 0x20e   :  { %v321_v51 = vsel %vm317_vm1, %v314_v49, -inf }
 0x20f   :  { %322 = vmax.xlane.f32.xlu0 %v321_v51 }
 0x298   :  { %v320_v52 = vpop.xlane.xlu0 %319 }
 0x299   :  { %v324_v53 = vsub.f32 %v244_v44, %v320_v52 }
 0x29b   :  { %v326_v54 = vmul.f32 1.442695, %v324_v53 }
 0x29c   :  { %v323_v55 = vpop.xlane.xlu0 %322 }
 0x29d   :  { %635 = vpow2.f32 %v326_v54  ;;  %v325_v56 = vsub.f32 %v314_v49, %v323_v55 }
 0x29f   :  { %v328_v57 = vmul.f32 1.442695, %v325_v56 }
 0x2a1   :  { %637 = vpow2.f32 %v328_v57 }
 0x2a7   :  { %v636_v58 = vpop.eup %635 }
 0x2a8   :  { %v330_v59 = vsel %vm317_vm1, %v636_v58, 0.0 }
 0x2a9   :  { %331 = vadd.xlane.f32.xlu1 %v330_v59 }
 0x2ab   :  { %v638_v60 = vpop.eup %637 }
 0x2ac   :  { %v333_v61 = vsel %vm317_vm1, %v638_v60, 0.0 }
 0x2ad   :  { %334 = vadd.xlane.f32.xlu1 %v333_v61 }
 0x336   :  { %v332_v62 = vpop.xlane.xlu1 %331 }
 0x337   :  { %639 = vrcp.f32 %v332_v62 }
 0x33a   :  { %v335_v63 = vpop.xlane.xlu1 %334 }
 0x33b   :  { %641 = vrcp.f32 %v335_v63 }
 0x341   :  { %v640_v0 = vpop.eup %639 }
 0x342   :  { %v338_v1 = vmul.f32 %v640_v0, %v636_v58 }
 0x344   :  { %588 = vmatmul.mubr.msk.f32.vlgmr.msra.gmra.mrb[4].mxu1 %vm317_vm1, %v338_v1 }
 0x345   :  { %v642_v2 = vpop.eup %641  ;;  %591 = vmatpush3.msra.mxu1 %v822_v27  ;;  %592 = vmatprep.mubr.msk.f32.mxu1 %vm743_vm0, %v742_v28 }
 0x346   :  { %v339_v3 = vmul.f32 %v642_v2, %v638_v60 }
 0x348   :  { %593 = vmatmul.mubr.msk.f32.vlgmr.msra.gmra.mrb[6].mxu1 %vm317_vm1, %v339_v3 }
 0x417   :  { %v409_v4 = vpop.f32.mrb[4].mxu1 }
 0x418   :  { %486 = vst [vmem:[#allocation8] sm:$0xff] %v409_v4  ;;  %v589_v5 = vpop.f32.mrb[5].mxu1 }
 0x41b   :  { %v482_v6 = vpop.f32.mrb[6].mxu1 }
 0x41c   :  { %487 = vst [vmem:[#allocation8 + $0x8] sm:$0xff] %v482_v6  ;;  %v594_v7 = vpop.f32.mrb[7].mxu1 }
 0x41d   :  { %720 = shalt.err (!%p717_p0)
}
 0x41e   :  { %s721_s6 = scalar_lea.hbm %s866_s4, 256 }
 0x41f   :  { %p722_p1 = scmp.ne.s32.totalorder %s866_s4, %s721_s6  ;;  %p725_p2 = scmp.lt.u32.totalorder %s721_s6, %s866_s4 }
 0x421   :  { %p727_p3 = pnand %p725_p2, %p722_p1 }
 0x423   :  { %730 = shalt.err (!%p727_p3)
}
 0x424   :  { %499 = dma.vmem_to_hbm [thread:$0]  %s494_s26, 256, %s866_s4, [#allocation4], %s739_s27, %s739_s27, %s740_s28  }
 0x425   :  { %735 = dma.done.wait [#allocation4], 256  }
 0x426   :  { %736 = vsyncadd [#allocation4], 4294967040 }
 0x427   :  { %503 = vsyncpa [#allocation3], 1 }
 0x428   :  { %504 = vsyncpa [#allocation6], 1 }
 0x429   :  { %505 = vsyncpa [#allocation4], 1 }

</bundles_post_ra>
